<compile_context>
chip_gen: v6e
topology: v6e:2x2x1
jax: 0.10.0
libtpu: 0.0.40
codegen_flags: <defaults>
</compile_context>

<pallas_src>
import jax
import jax.numpy as jnp
from jax.experimental import pallas as pl
from jax.experimental.pallas import tpu as pltpu

BN_EPS = 1e-5


def _pick_tile(dim, cap):
    """Largest multiple of 128 that divides `dim` and is <= cap; else full dim."""
    best = None
    t = 128
    limit = min(cap, dim)
    while t <= limit:
        if dim % t == 0:
            best = t
        t += 128
    return best if best is not None else dim


def encoder_kernel(x_ref, w_ref, gamma_ref, beta_ref, o_ref, acc_ref):
    # Grid: (n, k) = (E tile, K tile).  K is the reduction axis (innermost).
    k = pl.program_id(1)

    @pl.when(k == 0)
    def _init():
        acc_ref[...] = jnp.zeros_like(acc_ref)

    # bf16 x bf16 -> f32 accumulation on the MXU.
    acc_ref[...] += jnp.dot(
        x_ref[...], w_ref[...], preferred_element_type=jnp.float32
    )

    @pl.when(k == pl.num_programs(1) - 1)
    def _finalize():
        h = acc_ref[...]
        # BatchNorm1d (training-mode forward): per-feature stats over batch,
        # biased variance, eps=1e-5.  (The Linear bias is omitted upstream:
        # it is exactly cancelled by this mean subtraction.)
        mean = jnp.mean(h, axis=0, keepdims=True)
        centered = h - mean
        var = jnp.mean(centered * centered, axis=0, keepdims=True)
        normed = centered * jax.lax.rsqrt(var + BN_EPS)
        # Affine (gamma=1, beta=0 at init).  Dropout -> identity (inference).
        o_ref[...] = (gamma_ref[...] * normed + beta_ref[...]).astype(o_ref.dtype)


def encoder_forward(x_nchw, w, gamma, beta, *, tk=None, tn=None):
    """x_nchw: (B, C, H, W) float32; w: (K, E).  Returns (B, E) float32."""
    B = x_nchw.shape[0]
    K, E = w.shape

    # Glue (plain JAX): flatten like features.reshape(B, -1), cast the two
    # big operands to bf16 to halve HBM traffic (accumulation stays f32).
    x2d = x_nchw.reshape(B, K).astype(jnp.bfloat16)
    w16 = w.astype(jnp.bfloat16)

    # Tile sizes: lane-aligned, divide K/E, and sized well under the smallest
    # per-generation VMEM (v7x: 64 MiB physical / 32 MiB scoped default).
    # bf16 double-buffered W tile = TK*TN*2B*2buf  (8192*512 -> 16 MiB worst case,
    # but caps below keep the demo far smaller).
    if tk is None:
        tk = _pick_tile(K, 4096)
    if tn is None:
        tn = _pick_tile(E, 512)
    assert K % tk == 0 and E % tn == 0

    grid = (E // tn, K // tk)

    return pl.pallas_call(
        encoder_kernel,
        out_shape=jax.ShapeDtypeStruct((B, E), jnp.float32),
        grid_spec=pltpu.PrefetchScalarGridSpec(
            num_scalar_prefetch=0,
            grid=grid,
            in_specs=[
                # X tile: depends only on k (re-streamed per E tile, tiny for small B).
                pl.BlockSpec((B, tk), lambda n, k: (0, k)),
                # W tile: the dominant HBM stream, pipelined along k.
                pl.BlockSpec((tk, tn), lambda n, k: (k, n)),
                # gamma/beta: constant along k -> DMA'd once per E tile.
                pl.BlockSpec((1, tn), lambda n, k: (0, n)),
                pl.BlockSpec((1, tn), lambda n, k: (0, n)),
            ],
            # Output block fixed across k -> stays resident (accumulator output).
            out_specs=pl.BlockSpec((B, tn), lambda n, k: (0, n)),
            scratch_shapes=[pltpu.VMEM((B, tn), jnp.float32)],
        ),
        compiler_params=pltpu.CompilerParams(
            # E tiles are independent -> "parallel" (2 TCs on v7x);
            # K is the reduction -> "arbitrary".
            dimension_semantics=("parallel", "arbitrary"),
        ),
    )(x2d, w16, gamma, beta)


def init_params(key, in_features, embed_size):
    """Deterministic init mirroring init_weights(): xavier_uniform W, zero bias,
    BatchNorm1d default affine (gamma=1, beta=0).  The bias is kept for
    interface fidelity but not used by the kernel (cancelled by BN mean)."""
    bound = (6.0 / (in_features + embed_size)) ** 0.5
    w = jax.random.uniform(
        key, (in_features, embed_size), jnp.float32, minval=-bound, maxval=bound
    )
    b = jnp.zeros((1, embed_size), jnp.float32)
    gamma = jnp.ones((1, embed_size), jnp.float32)
    beta = jnp.zeros((1, embed_size), jnp.float32)
    return w, b, gamma, beta


def reference_forward(x_nchw, w, b, gamma, beta):
    """Pure-JAX reference using the same bf16-cast inputs (f32 math) so the
    comparison isolates kernel correctness from the deliberate bf16 cast."""
    B = x_nchw.shape[0]
    xb = x_nchw.reshape(B, -1).astype(jnp.bfloat16).astype(jnp.float32)
    wb = w.astype(jnp.bfloat16).astype(jnp.float32)
    h = xb @ wb + b  # bias cancels under the mean subtraction below (b=0 here)
    mean = jnp.mean(h, axis=0, keepdims=True)
    var = jnp.mean((h - mean) ** 2, axis=0, keepdims=True)
    return gamma * (h - mean) * jax.lax.rsqrt(var + BN_EPS) + beta


if __name__ == "__main__":
    # Small synthetic shapes consistent with the forward pass:
    # X: (batch=2, channels=4, spatial=16x16) -> flatten K = 1024, embed_size = 128.
    B, C, H, W = 2, 4, 16, 16
    EMBED = 128
    K = C * H * W

    key = jax.random.PRNGKey(0)
    kx, kw = jax.random.split(key)

    x = jax.random.normal(kx, (B, C, H, W), jnp.float32)
    w, b, gamma, beta = init_params(kw, K, EMBED)

    # tk=512 forces a 2-step K reduction so the accumulator pipeline path is
    # exercised even at these tiny demo shapes.
    out = encoder_forward(x, w, gamma, beta, tk=512)
    out = jax.block_until_ready(out)

    ref = reference_forward(x, w, b, gamma, beta)
    assert out.shape == (B, EMBED)
    assert jnp.allclose(out, ref, atol=2e-3, rtol=2e-3), float(
        jnp.max(jnp.abs(out - ref))
    )

    print("KERNEL_OK")
</pallas_src>

<mosaic_0001>
module attributes {stable_mosaic.version = 11 : i64} {
  func.func @encoder_kernel(%arg0: i32, %arg1: i32, %arg2: memref<2x512xbf16, #tpu.memory_space<vmem>>, %arg3: memref<512x128xbf16, #tpu.memory_space<vmem>>, %arg4: memref<1x128xf32, #tpu.memory_space<vmem>>, %arg5: memref<1x128xf32, #tpu.memory_space<vmem>>, %arg6: memref<2x128xf32, #tpu.memory_space<vmem>>, %arg7: memref<2x128xf32, #tpu.memory_space<vmem>>) attributes {dimension_semantics = [#tpu.dimension_semantics<parallel>, #tpu.dimension_semantics<arbitrary>], iteration_bounds = array<i64: 1, 2>, scalar_prefetch = 0 : i64, scratch_operands = 1 : i64, tpu.core_type = #tpu.core_type<tc>, window_params = [{transform_indices = @transform_0, window_bounds = array<i64: 2, 512>}, {transform_indices = @transform_1, window_bounds = array<i64: 512, 128>}, {transform_indices = @transform_2, window_bounds = array<i64: 1, 128>}, {transform_indices = @transform_3, window_bounds = array<i64: 1, 128>}, {transform_indices = @transform_4, window_bounds = array<i64: 2, 128>}]} {
    %c0_i32 = arith.constant 0 : i32
    %0 = arith.cmpi eq, %arg1, %c0_i32 : i32
    %1 = arith.extui %0 : i1 to i32
    %c0_i32_0 = arith.constant 0 : i32
    %2 = arith.cmpi ne, %1, %c0_i32_0 : i32
    scf.if %2 {
      %cst_9 = arith.constant 0.000000e+00 : f32
      %12 = vector.broadcast %cst_9 : f32 to vector<2x128xf32>
      %c0_10 = arith.constant 0 : index
      %c0_11 = arith.constant 0 : index
      %13 = vector.load %arg7[%c0_10, %c0_11] : memref<2x128xf32, #tpu.memory_space<vmem>>, vector<2x128xf32>
      tpu.vector_store %arg7[%c0_10, %c0_11], %12 {strides = array<i32>} : memref<2x128xf32, #tpu.memory_space<vmem>>, vector<2x128xf32>,
    } else {
    }
    %c0 = arith.constant 0 : index
    %c0_1 = arith.constant 0 : index
    %3 = vector.load %arg7[%c0, %c0_1] : memref<2x128xf32, #tpu.memory_space<vmem>>, vector<2x128xf32>
    %c0_2 = arith.constant 0 : index
    %c0_3 = arith.constant 0 : index
    %4 = vector.load %arg2[%c0_2, %c0_3] : memref<2x512xbf16, #tpu.memory_space<vmem>>, vector<2x512xbf16>
    %c0_4 = arith.constant 0 : index
    %c0_5 = arith.constant 0 : index
    %5 = vector.load %arg3[%c0_4, %c0_5] : memref<512x128xbf16, #tpu.memory_space<vmem>>, vector<512x128xbf16>
    %cst = arith.constant dense<0.000000e+00> : vector<2x128xf32>
    %6 = tpu.matmul %4, %5, %cst {dimension_numbers = #tpu.dot_dimension_numbers<[1], [0], [0], [1], [0, 0, 1, 1], [], []>} : vector<2x512xbf16>, vector<512x128xbf16>, vector<2x128xf32> -> vector<2x128xf32>
    %7 = arith.addf %3, %6 : vector<2x128xf32>
    %c0_6 = arith.constant 0 : index
    %c0_7 = arith.constant 0 : index
    %8 = vector.load %arg7[%c0_6, %c0_7] : memref<2x128xf32, #tpu.memory_space<vmem>>, vector<2x128xf32>
    tpu.vector_store %arg7[%c0_6, %c0_7], %7 {strides = array<i32>} : memref<2x128xf32, #tpu.memory_space<vmem>>, vector<2x128xf32>,
    %c1_i32 = arith.constant 1 : i32
    %9 = arith.cmpi eq, %arg1, %c1_i32 : i32
    %10 = arith.extui %9 : i1 to i32
    %c0_i32_8 = arith.constant 0 : i32
    %11 = arith.cmpi ne, %10, %c0_i32_8 : i32
    scf.if %11 {
      %c0_9 = arith.constant 0 : index
      %c0_10 = arith.constant 0 : index
      %12 = vector.load %arg7[%c0_9, %c0_10] : memref<2x128xf32, #tpu.memory_space<vmem>>, vector<2x128xf32>
      %cst_11 = arith.constant dense<0.000000e+00> : vector<128xf32>
      %13 = vector.multi_reduction <add>, %12, %cst_11 [0] : vector<2x128xf32> to vector<128xf32>
      %14 = vector.shape_cast %13 : vector<128xf32> to vector<1x128xf32>
      %cst_12 = arith.constant 2.000000e+00 : f32
      %15 = vector.broadcast %cst_12 : f32 to vector<1x128xf32>
      %16 = arith.divf %14, %15 : vector<1x128xf32>
      %17 = vector.broadcast %16 : vector<1x128xf32> to vector<2x128xf32>
      %18 = arith.subf %12, %17 : vector<2x128xf32>
      %19 = arith.mulf %18, %18 : vector<2x128xf32>
      %cst_13 = arith.constant dense<0.000000e+00> : vector<128xf32>
      %20 = vector.multi_reduction <add>, %19, %cst_13 [0] : vector<2x128xf32> to vector<128xf32>
      %21 = vector.shape_cast %20 : vector<128xf32> to vector<1x128xf32>
      %cst_14 = arith.constant 2.000000e+00 : f32
      %22 = vector.broadcast %cst_14 : f32 to vector<1x128xf32>
      %23 = arith.divf %21, %22 : vector<1x128xf32>
      %cst_15 = arith.constant 9.99999974E-6 : f32
      %24 = vector.broadcast %cst_15 : f32 to vector<1x128xf32>
      %25 = arith.addf %23, %24 : vector<1x128xf32>
      %26 = math.rsqrt %25 : vector<1x128xf32>
      %27 = vector.broadcast %26 : vector<1x128xf32> to vector<2x128xf32>
      %28 = arith.mulf %18, %27 : vector<2x128xf32>
      %c0_16 = arith.constant 0 : index
      %c0_17 = arith.constant 0 : index
      %29 = vector.load %arg4[%c0_16, %c0_17] : memref<1x128xf32, #tpu.memory_space<vmem>>, vector<1x128xf32>
      %30 = vector.broadcast %29 : vector<1x128xf32> to vector<2x128xf32>
      %31 = arith.mulf %30, %28 : vector<2x128xf32>
      %c0_18 = arith.constant 0 : index
      %c0_19 = arith.constant 0 : index
      %32 = vector.load %arg5[%c0_18, %c0_19] : memref<1x128xf32, #tpu.memory_space<vmem>>, vector<1x128xf32>
      %33 = vector.broadcast %32 : vector<1x128xf32> to vector<2x128xf32>
      %34 = arith.addf %31, %33 : vector<2x128xf32>
      %c0_20 = arith.constant 0 : index
      %c0_21 = arith.constant 0 : index
      %35 = vector.load %arg6[%c0_20, %c0_21] : memref<2x128xf32, #tpu.memory_space<vmem>>, vector<2x128xf32>
      tpu.vector_store %arg6[%c0_20, %c0_21], %34 {strides = array<i32>} : memref<2x128xf32, #tpu.memory_space<vmem>>, vector<2x128xf32>,
    } else {
    }
    return
  }
  func.func @transform_0(%arg0: i32, %arg1: i32) -> (i32, i32) {
    %c0_i32 = arith.constant 0 : i32
    %c0_i32_0 = arith.constant 0 : i32
    return %c0_i32, %arg1 : i32, i32
  }
  func.func @transform_1(%arg0: i32, %arg1: i32) -> (i32, i32) {
    %c0_i32 = arith.constant 0 : i32
    return %arg1, %arg0 : i32, i32
  }
  func.func @transform_2(%arg0: i32, %arg1: i32) -> (i32, i32) {
    %c0_i32 = arith.constant 0 : i32
    %c0_i32_0 = arith.constant 0 : i32
    return %c0_i32, %arg0 : i32, i32
  }
  func.func @transform_3(%arg0: i32, %arg1: i32) -> (i32, i32) {
    %c0_i32 = arith.constant 0 : i32
    %c0_i32_0 = arith.constant 0 : i32
    return %c0_i32, %arg0 : i32, i32
  }
  func.func @transform_4(%arg0: i32, %arg1: i32) -> (i32, i32) {
    %c0_i32 = arith.constant 0 : i32
    %c0_i32_0 = arith.constant 0 : i32
    return %c0_i32, %arg0 : i32, i32
  }
}

</mosaic_0001>

<bundles_post_ra>
// kernel: tpu_custom_call.1
= control target key start
LH: loop header
LB: loop body
LE: loop exit
PB: predicated region body
PF: predicated region fallthrough
CT: control target
= control target key end

     0   :  { %9 = vsyncpa [#allocation4], 0  ;;  %s1396_s0 = inlined_call_operand.hbm [shape: bf16[2,1024], index: 0, kind: input, shape index: {}]   ;;  %s1397_s1 = inlined_call_operand.hbm [shape: bf16[1024,128], index: 1, kind: input, shape index: {}]   ;;  %s1398_s2 = inlined_call_operand.vmem [shape: f32[1,128], index: 2, kind: input, shape index: {}]   ;;  %s1399_s3 = inlined_call_operand.vmem [shape: f32[1,128], index: 3, kind: input, shape index: {}]   ;;  %s1400_s4 = inlined_call_operand.hbm [shape: f32[2,128], index: 4, kind: output, shape index: {}]  }
   0x1   :  { %11 = vsyncpa [#allocation4 + $0x1], 0 }
   0x2   :  { %12 = vsyncpa [#allocation7], 0 }
   0x3   :  { %14 = vsyncpa [#allocation7 + $0x1], 0 }
   0x4   :  { %15 = vsyncpa [#allocation5], 0  ;;  %s1209_s15 = smov 0   ;;  %s1211_s16 = smov 0  }
   0x5   :  { %s1213_s17 = smov 0   ;;  %s1215_s18 = smov 0  }
   0x6   :  { %s1217_s19 = smov 0   ;;  %s1219_s20 = smov 0  }
   0x7 LB: > { %s831_s21 = sadd.s32 4294967295, %s1175_s20   ;;  %s30_s22 = sadd.s32 1, %s1171_s19  ;;  %s1175_s20 = sphi %s1219_s20, %s21_s20   ;;  %s1171_s19 = sphi %s1217_s19, %s1410_s19   ;;  %s1167_s18 = sphi %s1215_s18, %s1409_s18   ;;  %s1163_s17 = sphi %s1213_s17, %s1408_s17   ;;  %s1159_s16 = sphi %s1211_s16, %s1407_s16   ;;  %s1155_s15 = sphi %s1209_s15, %s1406_s15  }
   0x8   : > { %p31_p0 = scmp.ge.s32.totalorder %s30_s22, 2  ;;  %s40_s23 = sadd.s32 1, %s1163_s17 }
   0x9   : > { %p47_p1 = scmp.ne.s32.totalorder %s1163_s17, %s1159_s16  ;;  %p48_p2 = scmp.eq.s32.totalorder %s1175_s20, 0 }
   0xa   : > { %s1412_s22 = smov (%p31_p0, %s30_s22), 0  ;;  %p53_p4 = scmp.ne.s32.totalorder %s1159_s16, %s1155_s15 }
   0xb   : > { %p1245_p3 = por %p48_p2, %p47_p1  ;;  %s37_s25 = ssub.s32 %s1171_s19, %s1412_s22 }
   0xc   : > { %p54_p5 = scmp.eq.s32.totalorder %s831_s21, 0  ;;  %p38_p6 = scmp.eq.s32.totalorder %s37_s25, 0 }
   0xd   : > { %p947_p8 = scmp.lt.s32.totalorder %s1175_s20, 2  ;;  %s1263_s28 = sand.u32 1, %s1163_s17  }
   0xe   : > { %p1254_p7 = por %p54_p5, %p53_p4  ;;  %s886_s29 = sshll.u32 %s1171_s19, 6 }
   0xf   : > { %s1260_s27 = scalar_select %p38_p6, %s1163_s17, %s40_s23  }
  0x10   : > { %s836_s30 = sshll.u32 %s1263_s28, 2  ;;  %s205_s7 = scalar_lea.hbm %s1396_s0, %s886_s29 }
  0x11   : > { %s199_s8 = scalar_lea.vmem [#allocation3], %s836_s30  ;;  %p1272_p9 = pnand %p947_p8, %p1245_p3 }
  0x12   : > { %s207_s9 = sshll.u32 %s199_s8, 4  ;;  %p842_p10 = scmp.ge.s32.totalorder %s1175_s20, 1  ;;  %s208_s9 = int_to_ptr.vmem [resolvable:$true] %s207_s9 }
  0x13   : > { %p234_p11 = scmp.lt.s32.totalorder %s1175_s20, 3  ;;  %s196_s11 = scalar_lea.sflag [#allocation4], %s1263_s28 }
  0x14   : > { %p1039_p12 = pneg %p1272_p9  ;;  %s1050_s12 = scalar_lea.vmem %s208_s9, 64 }
  0x15   : > { %p1051_p13 = scmp.ne.s32.totalorder %s208_s9, %s1050_s12  ;;  %s1177_s13 = smov [#allocation3]  }
  0x16   : > { %s1055_s14 = sshll.u32 %s1177_s13, 4  ;;  %s1056_s14 = int_to_ptr.vmem [resolvable:$false] %s1055_s14 }
  0x17   : > { %p1053_p0 = pnand %p1051_p13, %p1039_p12  ;;  %s1057_s15 = scalar_lea.vmem %s1056_s14, 128 }
  0x18   : > { %p1058_p2 = scmp.lt.s32.totalorder %s208_s9, %s1056_s14  ;;  %p1059_p3 = scmp.lt.s32.totalorder %s1057_s15, %s1050_s12 }
  0x19   : > { %p1054_p1 = pneg %p1053_p0 }
  0x1a   : > { %p1060_p4 = por %p1059_p3, %p1058_p2 }
  0x1c   : > { %p1061_p5 = pnand %p1060_p4, %p1054_p1 }
  0x1e   : > { %1064 = shalt.err (!%p1061_p5)
}
  0x1f   : > { %943 = dma.hbm_to_vmem [thread:$0]  (!%p1272_p9), %s205_s7, 64, %s208_s9, %s196_s11  }
  0x20   : > { %p1290_p6 = pnand %p842_p10, %p234_p11  ;;  %s839_s24 = sshll.u32 %s1263_s28, 8 }
  0x21   : > { %s887_s25 = sshll.u32 %s1171_s19, 12  ;;  %s218_s6 = scalar_lea.vmem [#allocation6], %s839_s24 }
  0x22   : > { %s225_s5 = scalar_lea.hbm %s1397_s1, %s887_s25  ;;  %s226_s8 = sshll.u32 %s218_s6, 4  ;;  %s227_s8 = int_to_ptr.vmem [resolvable:$true] %s226_s8 }
  0x23   : > { %s215_s12 = scalar_lea.sflag [#allocation7], %s1263_s28  ;;  %s1078_s13 = scalar_lea.vmem %s227_s8, 4096 }
  0x24   : > { %p1079_p8 = scmp.ne.s32.totalorder %s227_s8, %s1078_s13  ;;  %s1178_s7 = smov [#allocation6]  }
  0x25   : > { %s1083_s9 = sshll.u32 %s1178_s7, 4  ;;  %s1084_s9 = int_to_ptr.vmem [resolvable:$false] %s1083_s9 }
  0x26   : > { %p1081_p13 = pnand %p1079_p8, %p1039_p12  ;;  %s1085_s11 = scalar_lea.vmem %s1084_s9, 8192 }
  0x27   : > { %p1086_p10 = scmp.lt.s32.totalorder %s227_s8, %s1084_s9  ;;  %p1087_p11 = scmp.lt.s32.totalorder %s1085_s11, %s1078_s13 }
  0x28   : > { %p1082_p0 = pneg %p1081_p13 }
  0x29   : > { %p1088_p1 = por %p1087_p11, %p1086_p10 }
  0x2b   : > { %p1089_p2 = pnand %p1088_p1, %p1082_p0 }
  0x2d   : > { %1092 = shalt.err (!%p1089_p2)
}
  0x2e   : > { %s1179_s14 = smov 64   ;;  %s1180_s15 = smov 4  }
  0x2f   : > { %946 = dma.hbm_to_vmem [thread:$0]  (!%p1272_p9), %s225_s5, 4096, %s227_s8, %s215_s12, %s1179_s14, %s1179_s14, %s1180_s15  }
  0x30   : > { %238 = sbr.rel (%p1290_p6) target bundleno = 382 (0x17e), region = 36  ;;  %s240_s28 = sand.u32 (!%p1290_p6), 1, %s1159_s16  }
  0x31   : > { %s843_s24 = sshll.u32 (!%p1290_p6), %s240_s28, 2  ;;  %s241_s25 = scalar_lea.sflag (!%p1290_p6), [#allocation4], %s240_s28 }
  0x32   : > { %s1308_s29 = scalar_lea.vmem (!%p1290_p6), [#allocation3], %s843_s24 }
  0x35   : > { %1142 = dma.done.wait (%p1254_p7), %s241_s25, 64  }
  0x36   : > { %1144 = vsyncadd (%p1254_p7), %s241_s25, 4294967232  ;;  %s844_s30 = sshll.u32 %s240_s28, 8  ;;  %s250_s6 = scalar_lea.sflag [#allocation7], %s240_s28 }
  0x37   : > { %s1314_s10 = scalar_lea.vmem [#allocation6], %s844_s30 }
  0x38   : > { %1146 = dma.done.wait (%p1254_p7), %s250_s6, 4096  }
  0x39   : > { %1148 = vsyncadd (%p1254_p7), %s250_s6, 4294963200  ;;  %p845_p9 = scmp.ne.s32.totalorder %s1167_s18, 0 }
  0x3b   : > { %296 = sbr.rel (%p845_p9) target bundleno = 66 (0x42), region = 48 }
  0x40   : > { %v1181_v0 = vmov 0.0  }
  0x41   : > { %297 = vst [vmem:[#allocation2] sm:$0x3] %v1181_v0 }
  0x42 PF: > { %v1003_v1 = vld [vmem:[%s1314_s10 + $0x78] sm:$0xff]   ;;  %v1007_v5 = vld [vmem:[%s1314_s10 + $0x70] sm:$0xff]   ;;  %v1011_v9 = vld [vmem:[%s1314_s10 + $0x68] sm:$0xff]   ;;  %v376_v31 = vlaneseq  ;;  %v1182_v35 = vmov 1966171168   ;;  %p879_p7 = scmp.ne.s32.totalorder %s1167_s18, 1 }
  0x43   : > { %v1004_v2 = vld [vmem:[%s1314_s10 + $0xf8] sm:$0xff]   ;;  %888 = vmatprep.subr.bf16.mxu0 %v1003_v1  ;;  %v1008_v6 = vld [vmem:[%s1314_s10 + $0xf0] sm:$0xff]   ;;  %v1012_v10 = vld [vmem:[%s1314_s10 + $0xe8] sm:$0xff]   ;;  %v374_v36 = vunpack.c.l.s4 %v1182_v35 }
  0x44   : > { %v1005_v3 = vld [vmem:[%s1314_s10 + $0x38] sm:$0xff]   ;;  %910 = vmatprep.subr.bf16.mxu1 %v1004_v2  ;;  %v1009_v7 = vld [vmem:[%s1314_s10 + $0x30] sm:$0xff]   ;;  %v1013_v11 = vld [vmem:[%s1314_s10 + $0x28] sm:$0xff]   ;;  %v377_v37 = vshrl.u32 %v376_v31, 7 }
  0x45   : > { %v1006_v4 = vld [vmem:[%s1314_s10 + $0xb8] sm:$0xff]   ;;  %889 = vmatpush3.bf16.msra.mxu0 %v1005_v3  ;;  %v1010_v8 = vld [vmem:[%s1314_s10 + $0xb0] sm:$0xff]   ;;  %v1014_v12 = vld [vmem:[%s1314_s10 + $0xa8] sm:$0xff]   ;;  %v375_v39 = vunpack.c.0.s8 %v374_v36 }
  0x46   : > { %911 = vmatpush3.bf16.msra.mxu1 %v1006_v4  ;;  %890 = vmatprep.subr.bf16.mxu0 %v1007_v5  ;;  %v1015_v13 = vld [vmem:[%s1314_s10 + $0x60] sm:$0xff]   ;;  %v1019_v17 = vld [vmem:[%s1314_s10 + $0x58] sm:$0xff]   ;;  %v1023_v21 = vld [vmem:[%s1314_s10 + $0x50] sm:$0xff]  }
  0x47   : > { %912 = vmatprep.subr.bf16.mxu1 %v1008_v6  ;;  %v1016_v14 = vld [vmem:[%s1314_s10 + $0xe0] sm:$0xff]   ;;  %v1020_v18 = vld [vmem:[%s1314_s10 + $0xd8] sm:$0xff]   ;;  %v1024_v22 = vld [vmem:[%s1314_s10 + $0xd0] sm:$0xff]   ;;  %v378_v40 = vsub.s32 %v375_v39, %v377_v37 }
  0x48   : > { %v1017_v15 = vld [vmem:[%s1314_s10 + $0x20] sm:$0xff]   ;;  %v1021_v19 = vld [vmem:[%s1314_s10 + $0x18] sm:$0xff]   ;;  %v1025_v23 = vld [vmem:[%s1314_s10 + $0x10] sm:$0xff]  }
  0x49   : > { %891 = vmatpush3.bf16.msra.mxu0 %v1009_v7  ;;  %v1018_v16 = vld [vmem:[%s1314_s10 + $0xa0] sm:$0xff]   ;;  %v1022_v20 = vld [vmem:[%s1314_s10 + $0x98] sm:$0xff]   ;;  %v1026_v24 = vld [vmem:[%s1314_s10 + $0x90] sm:$0xff]  }
  0x4a   : > { %913 = vmatpush3.bf16.msra.mxu1 %v1010_v8  ;;  %892 = vmatprep.subr.bf16.mxu0 %v1011_v9  ;;  %v1027_v25 = vld [vmem:[%s1314_s10 + $0x48] sm:$0xff]   ;;  %v1031_v29 = vld [vmem:[%s1314_s10 + $0x40] sm:$0xff]   ;;  %v846_v34 = vld.sshfl [vmem:[%s1308_s29] sm:$0x33 pattern:$0x75316420] }
  0x4b   : > { %914 = vmatprep.subr.bf16.mxu1 %v1012_v10  ;;  %v1028_v26 = vld [vmem:[%s1314_s10 + $0xc8] sm:$0xff]   ;;  %v1032_v30 = vld [vmem:[%s1314_s10 + $0xc0] sm:$0xff]   ;;  %v372_v38 = vcombine.high %v846_v34, %v846_v34  ;;  %v379_v42 = vrot.slane %v846_v34, %v378_v40  ;;  %v298_v52 = vld [vmem:[#allocation2] sm:$0x3] }
  0x4c   : > { %v1029_v27 = vld [vmem:[%s1314_s10 + $0x8] sm:$0xff]   ;;  %v1033_v32 = vld [vmem:[%s1314_s10] sm:$0xff]  }
  0x4d   : > { %893 = vmatpush3.bf16.msra.mxu0 %v1013_v11  ;;  %v1030_v28 = vld [vmem:[%s1314_s10 + $0x88] sm:$0xff]   ;;  %v1034_v33 = vld [vmem:[%s1314_s10 + $0x80] sm:$0xff]   ;;  %v386_v41 = vrot.slane %v372_v38, %v378_v40  ;;  %v387_v44 = vcombine.high %v379_v42, %v379_v42 }
  0x4e   : > { %915 = vmatpush3.bf16.msra.mxu1 %v1014_v12  ;;  %894 = vmatprep.subr.bf16.mxu0 %v1015_v13 }
  0x4f   : > { %916 = vmatprep.subr.bf16.mxu1 %v1016_v14  ;;  %617 = vmatprep.mubr.bf16.mxu0 %v386_v41  ;;  %v388_v43 = vcombine.high %v386_v41, %v386_v41 }
  0x51   : > { %895 = vmatpush3.bf16.msra.mxu0 %v1017_v15  ;;  %657 = vmatprep.mubr.bf16.mxu1 %v388_v43 }
  0x52   : > { %917 = vmatpush3.bf16.msra.mxu1 %v1018_v16  ;;  %896 = vmatprep.subr.bf16.mxu0 %v1019_v17 }
  0x53   : > { %918 = vmatprep.subr.bf16.mxu1 %v1020_v18 }
  0x55   : > { %897 = vmatpush3.bf16.msra.mxu0 %v1021_v19 }
  0x56   : > { %919 = vmatpush3.bf16.msra.mxu1 %v1022_v20  ;;  %898 = vmatprep.subr.bf16.mxu0 %v1023_v21 }
  0x57   : > { %920 = vmatprep.subr.bf16.mxu1 %v1024_v22 }
  0x59   : > { %899 = vmatpush3.bf16.msra.mxu0 %v1025_v23 }
  0x5a   : > { %921 = vmatpush3.bf16.msra.mxu1 %v1026_v24  ;;  %900 = vmatprep.subr.bf16.mxu0 %v1027_v25 }
  0x5b   : > { %922 = vmatprep.subr.bf16.mxu1 %v1028_v26 }
  0x5d   : > { %901 = vmatpush3.bf16.msra.mxu0 %v1029_v27 }
  0x5e   : > { %923 = vmatpush3.bf16.msra.mxu1 %v1030_v28  ;;  %902 = vmatprep.subr.bf16.mxu0 %v1031_v29 }
  0x5f   : > { %924 = vmatprep.subr.bf16.mxu1 %v1032_v30 }
  0x61   : > { %903 = vmatpush3.bf16.msra.mxu0 %v1033_v32 }
  0x62   : > { %925 = vmatpush3.bf16.msra.mxu1 %v1034_v33 }
  0x64   : > { %618 = vmatmul.mubr.bf16.vlgmr.msra.gmra.mxu0 %v379_v42 }
  0x65   : > { %658 = vmatmul.mubr.bf16.vlgmr.msra.gmra.mxu1 %v387_v44 }
 0x124   : > { %v904_v45 = vpop.f32.mrf.mxu0 }
 0x125   : > { %v926_v46 = vpop.f32.mrf.mxu1 }
 0x126   : > { %v905_v47 = vpop.f32.mrf.mxu0 }
 0x127   : > { %v906_v48 = vadd.f32 %v905_v47, %v904_v45  ;;  %v927_v49 = vpop.f32.mrf.mxu1 }
 0x128   : > { %v907_v50 = vpop.f32.mrf.mxu0  ;;  %v928_v51 = vadd.f32 %v927_v49, %v926_v46 }
 0x129   : > { %v929_v53 = vpop.f32.mrf.mxu1 }
 0x12a   : > { %v908_v54 = vpop.f32.mrf.mxu0  ;;  %v660_v55 = vadd.f32 %v928_v51, %v906_v48  ;;  %670 = sbr.rel (%p879_p7) target bundleno = 367 (0x16f), region = 52 }
 0x12b   : > { %v930_v56 = vpop.f32.mrf.mxu1 }
 0x12c   : > { %v665_v57 = vadd.f32 %v660_v55, %v298_v52 }
 0x12e   : > { %666 = vst [vmem:[#allocation2] sm:$0x3] %v665_v57 }
 0x12f   : > { %vm672_vm0 = vcmask 1041408   ;;  %v880_v15 = vld [vmem:[%s1398_s2] ss:$0 sm:$0xff] }
 0x130   : > { %v881_v17 = vld [vmem:[%s1399_s3] ss:$0 sm:$0xff] }
 0x135   : > { %v671_v58 = vld [vmem:[#allocation2] sm:$0x3] }
 0x136   : > { %v673_v59 = vsel %vm672_vm0, %v671_v58, 0.0 }
 0x137   : > { %v674_v60 = vrot.slane %v673_v59, 4 }
 0x139   : > { %v675_v61 = vadd.f32 %v674_v60, %v673_v59 }
 0x13b   : > { %v676_v62 = vrot.slane %v675_v61, 2 }
 0x13d   : > { %v677_v63 = vadd.f32 %v676_v62, %v675_v61 }
 0x13f   : > { %v678_v0 = vrot.slane %v677_v63, 1 }
 0x141   : > { %v679_v1 = vadd.f32 %v678_v0, %v677_v63 }
 0x143   : > { %v681_v2 = vmul.f32 0.5, %v679_v1 }
 0x145   : > { %v682_v3 = vsub.f32 %v671_v58, %v681_v2 }
 0x147   : > { %v683_v4 = vmul.f32 %v682_v3, %v682_v3 }
 0x149   : > { %v684_v5 = vsel %vm672_vm0, %v683_v4, 0.0 }
 0x14a   : > { %v685_v6 = vrot.slane %v684_v5, 4 }
 0x14c   : > { %v686_v7 = vadd.f32 %v685_v6, %v684_v5 }
 0x14e   : > { %v687_v8 = vrot.slane %v686_v7, 2 }
 0x150   : > { %v688_v9 = vadd.f32 %v687_v8, %v686_v7 }
 0x152   : > { %v689_v10 = vrot.slane %v688_v9, 1 }
 0x154   : > { %v690_v11 = vadd.f32 %v689_v10, %v688_v9 }
 0x156   : > { %v691_v12 = vmul.f32 0.5, %v690_v11 }
 0x158   : > { %v692_v13 = vadd.f32 1e-05, %v691_v12 }
 0x15a   : > { %1035 = vrsqrt.f32 %v692_v13 }
 0x167   : > { %v1036_v14 = vpop.eup %1035 }
 0x168   : > { %v694_v16 = vmul.f32 %v1036_v14, %v682_v3 }
 0x16a   : > { %v702_v18 = vmul.f32 %v880_v15, %v694_v16 }
 0x16c   : > { %v710_v19 = vadd.f32 %v881_v17, %v702_v18 }
 0x16e   : > { %711 = vst [vmem:[#allocation8] sm:$0x3] %v710_v19 }
 0x16f PF: > { %p1363_p12 = scmp.eq.s32.totalorder %s831_s21, 1  ;;  %s1183_s12 = smov [#allocation8]  }
 0x170   : > { %s721_s13 = sshll.u32 %s1183_s12, 4  ;;  %s722_s13 = int_to_ptr.vmem [resolvable:$true] %s721_s13 }
 0x171   : > { %s1093_s7 = scalar_lea.vmem %s722_s13, 32  ;;  %p1100_p6 = scmp.lt.s32.totalorder %s722_s13, %s722_s13 }
 0x172   : > { %p1094_p3 = scmp.ne.s32.totalorder %s722_s13, %s1093_s7  ;;  %p1101_p8 = scmp.lt.s32.totalorder %s1093_s7, %s1093_s7 }
 0x174   : > { %p1095_p4 = pnand %p1094_p3, %p1363_p12  ;;  %p1102_p13 = por %p1101_p8, %p1100_p6 }
 0x176   : > { %p1096_p5 = pneg %p1095_p4 }
 0x178   : > { %p1103_p0 = pnand %p1102_p13, %p1096_p5 }
 0x17a   : > { %1106 = shalt.err (!%p1103_p0)
}
 0x17b   : > { %937 = dma.vmem_to_hbm [thread:$0]  (%p1363_p12), %s722_s13, 32, %s1400_s4, [#allocation5]  }
 0x17c   : > { %1150 = dma.done.wait (%p1363_p12), [#allocation5], 32  }
 0x17d   : > { %1152 = vsyncadd (%p1363_p12), [#allocation5], 4294967264 }
 0x17e PF: > { %s21_s20 = sadd.s32 1, %s1175_s20   ;;  %s1406_s15 = smov %s1159_s16 }
 0x17f   : > { %p18_p10 = scmp.ge.s32.totalorder %s21_s20, 4   ;;  %s1407_s16 = smov %s1163_s17 }
 0x180   : > { %s1408_s17 = smov %s1260_s27  ;;  %s1409_s18 = smov %s1171_s19 }
 0x181   : > { %s1410_s19 = smov %s1412_s22  ;;  %20 = sbr.rel (!%p18_p10) target bundleno = 7 (0x7), region = 101 }
 0x186   :  { %734 = vsyncpa [#allocation4], 1 }
 0x187   :  { %736 = vsyncpa [#allocation4 + $0x1], 1 }
 0x188   :  { %737 = vsyncpa [#allocation7], 1 }
 0x189   :  { %739 = vsyncpa [#allocation7 + $0x1], 1 }
 0x18a   :  { %740 = vsyncpa [#allocation5], 1 }
 0x18b   :  { %742 = vsyncpa [#allocation5 + $0x1], 1 }

</bundles_post_ra>
